<compile_context>
chip_gen: v7x
topology: tpu7x:2x2x1
jax: 0.10.0
libtpu: 0.0.40
codegen_flags: <defaults>
</compile_context>

<pallas_src>
import functools

import jax
import jax.numpy as jnp
from jax.experimental import pallas as pl
from jax.experimental.pallas import tpu as pltpu


def _round_up(a, m):
    return ((a + m - 1) // m) * m


def _mlp_kernel(x_ref, w1_ref, b1_ref, w2_ref, b2_ref, w3_ref, b3_ref,
                w4_ref, b4_ref, o_ref):
    """Fused 4-layer MLP.

    bf16 matmul operands (MXU rate), fp32 accumulation + bias/ReLU on the VPU.
    """
    x = x_ref[...]  # bf16 (tile, H)

    h = jnp.dot(x, w1_ref[...], preferred_element_type=jnp.float32) + b1_ref[...]
    h = jnp.maximum(h, 0.0).astype(jnp.bfloat16)

    h = jnp.dot(h, w2_ref[...], preferred_element_type=jnp.float32) + b2_ref[...]
    h = jnp.maximum(h, 0.0).astype(jnp.bfloat16)

    h = jnp.dot(h, w3_ref[...], preferred_element_type=jnp.float32) + b3_ref[...]
    h = jnp.maximum(h, 0.0).astype(jnp.bfloat16)

    out = jnp.dot(h, w4_ref[...], preferred_element_type=jnp.float32) + b4_ref[...]
    o_ref[...] = out.astype(o_ref.dtype)


def _fold_bn_into_linear(w, b, gamma, beta, running_mean, running_var, eps=1e-5):
    """Fold eval-mode BatchNorm1d into the preceding Linear.

    Linear:  z = x @ w + b          (w: [in, out], b: [out])
    BN eval: y = (z - rm) * s * g + beta   with s = 1/sqrt(rv + eps)
    Fused:   y = x @ (w * g*s) + ((b - rm) * g*s + beta)
    """
    scale = gamma / jnp.sqrt(running_var + eps)
    w_f = w * scale[None, :]
    b_f = (b - running_mean) * scale + beta
    return w_f, b_f


@functools.partial(jax.jit, static_argnames=("row_tile", "single_buffer_weights"))
def _forward_impl(x_btc, params, row_tile, single_buffer_weights):
    B, T, H = x_btc.shape
    N = B * T

    # Fold BN (eval) into the Linears that precede it.
    w1, b1 = _fold_bn_into_linear(params["w1"], params["b1"], params["g1"],
                                  params["be1"], params["rm1"], params["rv1"])
    w2, b2 = _fold_bn_into_linear(params["w2"], params["b2"], params["g2"],
                                  params["be2"], params["rm2"], params["rv2"])
    w3, b3 = _fold_bn_into_linear(params["w3"], params["b3"], params["g3"],
                                  params["be3"], params["rm3"], params["rv3"])
    w4, b4 = params["w4"], params["b4"]

    H2 = w1.shape[1]            # hidden_dim * 2
    C = w4.shape[1]             # num_classes

    # --- lane-pad the final layer so output stores are 128-lane dense --------
    C_pad = _round_up(C, 128)
    if C_pad != C:
        w4 = jnp.pad(w4, ((0, 0), (0, C_pad - C)))
        b4 = jnp.pad(b4, (0, C_pad - C))

    # --- row tiling: big for MXU occupancy, but keep >= 2 grid steps when the
    # problem allows (v7x has 2 TensorCores); pad rows to a tile multiple ------
    tile = max(8, min(row_tile, _round_up(max(pl.cdiv(N, 2), 1), 8)))
    N_pad = _round_up(N, tile)

    x = x_btc.reshape(N, H)     # 'b t c -> (b t) c'
    if N_pad != N:
        x = jnp.pad(x, ((0, N_pad - N), (0, 0)))

    # --- bf16 matmul operands, fp32 biases ------------------------------------
    xb = x.astype(jnp.bfloat16)
    w1b, w2b, w3b, w4b = (w.astype(jnp.bfloat16) for w in (w1, w2, w3, w4))
    b1r, b2r, b3r, b4r = (b.reshape(1, -1).astype(jnp.float32)
                          for b in (b1, b2, b3, b4))

    const_kwargs = {}
    if single_buffer_weights:
        # Weights/biases have a constant index_map across the grid: single
        # buffering halves their resident VMEM footprint.
        const_kwargs = dict(pipeline_mode=pl.Buffered(buffer_count=1))

    def const_spec(shape):
        return pl.BlockSpec(shape, lambda i: (0, 0), **const_kwargs)

    # --- explicit scoped-VMEM budget (capped at 64 MiB for v7x) ---------------
    n_buf = 1 if single_buffer_weights else 2
    weight_bytes = 2 * (H * H2 + H2 * H2 + H2 * H + H * C_pad) * n_buf   # bf16
    bias_bytes = 4 * (2 * H2 + H + C_pad) * n_buf                        # fp32
    io_bytes = 2 * tile * H * 2 + 2 * tile * C_pad * 4                   # dbl-buf x/out
    interm_bytes = 4 * tile * H2 * 4                                     # live fp32 h
    est = weight_bytes + bias_bytes + io_bytes + interm_bytes
    vmem_limit = int(min(max(32 * 1024 * 1024, 2 * est), 64 * 1024 * 1024))

    out = pl.pallas_call(
        _mlp_kernel,
        out_shape=jax.ShapeDtypeStruct((N_pad, C_pad), jnp.float32),
        grid_spec=pltpu.PrefetchScalarGridSpec(
            num_scalar_prefetch=0,
            grid=(N_pad // tile,),
            in_specs=[
                pl.BlockSpec((tile, H), lambda i: (i, 0)),      # x rows (bf16)
                const_spec((H, H2)),  const_spec((1, H2)),      # layer 1
                const_spec((H2, H2)), const_spec((1, H2)),      # layer 2
                const_spec((H2, H)),  const_spec((1, H)),       # layer 3
                const_spec((H, C_pad)), const_spec((1, C_pad)),  # layer 4 (lane-padded)
            ],
            out_specs=pl.BlockSpec((tile, C_pad), lambda i: (i, 0)),
        ),
        compiler_params=pltpu.CompilerParams(
            dimension_semantics=("parallel",),
            vmem_limit_bytes=vmem_limit),
    )(xb, w1b, b1r, w2b, b2r, w3b, b3r, w4b, b4r)

    return out[:N, :C]


_SINGLE_BUFFER_WEIGHTS = None   # resolved on first call


def prediction_model_forward(x_btc, params, row_tile=512):
    """x_btc: (B, T, hidden_dim)  ->  (B*T, num_classes), eval-mode semantics."""
    global _SINGLE_BUFFER_WEIGHTS
    if _SINGLE_BUFFER_WEIGHTS is None:
        try:
            out = _forward_impl(x_btc, params, row_tile, True)
            out = jax.block_until_ready(out)
            _SINGLE_BUFFER_WEIGHTS = True
            return out
        except Exception:
            # This jax build rejects pl.Buffered(1) on pallas_call BlockSpecs:
            # fall back to default double-buffered weights (correct, more VMEM).
            _SINGLE_BUFFER_WEIGHTS = False
    return _forward_impl(x_btc, params, row_tile, _SINGLE_BUFFER_WEIGHTS)


def _reference_forward(x_btc, params):
    """Pure-JAX fp32 reference for correctness checking."""
    B, T, H = x_btc.shape
    x = x_btc.reshape(B * T, H)
    w1, b1 = _fold_bn_into_linear(params["w1"], params["b1"], params["g1"],
                                  params["be1"], params["rm1"], params["rv1"])
    w2, b2 = _fold_bn_into_linear(params["w2"], params["b2"], params["g2"],
                                  params["be2"], params["rm2"], params["rv2"])
    w3, b3 = _fold_bn_into_linear(params["w3"], params["b3"], params["g3"],
                                  params["be3"], params["rm3"], params["rv3"])
    h = jnp.maximum(x @ w1 + b1, 0.0)
    h = jnp.maximum(h @ w2 + b2, 0.0)
    h = jnp.maximum(h @ w3 + b3, 0.0)
    return h @ params["w4"] + params["b4"]


def init_params(key, hidden_dim, num_classes):
    """Deterministic synthetic parameters matching the PyTorch module shapes.

    Linear weights are stored as [in_features, out_features] (i.e. the
    transpose of torch's nn.Linear.weight) so the kernel computes x @ W.
    """
    H, H2 = hidden_dim, hidden_dim * 2
    ks = jax.random.split(key, 16)

    def lin(kw, kb, fan_in, fan_out):
        w = jax.random.normal(kw, (fan_in, fan_out), jnp.float32) * 0.1
        b = jax.random.normal(kb, (fan_out,), jnp.float32) * 0.05
        return w, b

    def bn(kg, kb, km, kv, dim):
        g = 1.0 + 0.1 * jax.random.normal(kg, (dim,), jnp.float32)
        be = 0.05 * jax.random.normal(kb, (dim,), jnp.float32)
        rm = 0.1 * jax.random.normal(km, (dim,), jnp.float32)
        rv = 1.0 + 0.1 * jnp.abs(jax.random.normal(kv, (dim,), jnp.float32))
        return g, be, rm, rv

    w1, b1 = lin(ks[0], ks[1], H, H2)
    g1, be1, rm1, rv1 = bn(ks[2], ks[3], ks[4], ks[5], H2)
    w2, b2 = lin(ks[6], ks[7], H2, H2)
    g2, be2, rm2, rv2 = bn(ks[8], ks[9], ks[10], ks[11], H2)
    w3, b3 = lin(ks[12], ks[13], H2, H)
    g3, be3, rm3, rv3 = bn(ks[14], ks[15], ks[0], ks[6], H)  # reuse keys, deterministic
    w4, b4 = lin(ks[3], ks[9], H, num_classes)

    return dict(w1=w1, b1=b1, g1=g1, be1=be1, rm1=rm1, rv1=rv1,
                w2=w2, b2=b2, g2=g2, be2=be2, rm2=rm2, rv2=rv2,
                w3=w3, b3=b3, g3=g3, be3=be3, rm3=rm3, rv3=rv3,
                w4=w4, b4=b4)


if __name__ == "__main__":
    # Small shapes consistent with forward: x is (b, t, hidden_dim).
    B, T, HIDDEN, NUM_CLASSES = 2, 8, 32, 8
    key = jax.random.PRNGKey(0)
    k_x, k_p, k_x2 = jax.random.split(key, 3)

    x = jax.random.normal(k_x, (B, T, HIDDEN), jnp.float32)
    params = init_params(k_p, HIDDEN, NUM_CLASSES)

    out = prediction_model_forward(x, params)
    out = jax.block_until_ready(out)
    ref = _reference_forward(x, params)
    assert out.shape == (B * T, NUM_CLASSES), out.shape
    # bf16 matmul operands -> slightly looser tolerance vs fp32 reference.
    assert jnp.allclose(out, ref, atol=2e-2, rtol=2e-2), "mismatch vs JAX reference"

    # Second shape with B*T not a multiple of the row tile (exercises padding).
    x2 = jax.random.normal(k_x2, (3, 5, HIDDEN), jnp.float32)
    out2 = jax.block_until_ready(prediction_model_forward(x2, params))
    ref2 = _reference_forward(x2, params)
    assert out2.shape == (15, NUM_CLASSES), out2.shape
    assert jnp.allclose(out2, ref2, atol=2e-2, rtol=2e-2), "mismatch (padded case)"

    print("KERNEL_OK")
</pallas_src>

<mosaic_0001>
module attributes {stable_mosaic.version = 11 : i64} {
  func.func @_mlp_kernel(%arg0: i32, %arg1: memref<8x32xbf16, #tpu.memory_space<vmem>>, %arg2: memref<32x64xbf16, #tpu.memory_space<vmem>>, %arg3: memref<1x64xf32, #tpu.memory_space<vmem>>, %arg4: memref<64x64xbf16, #tpu.memory_space<vmem>>, %arg5: memref<1x64xf32, #tpu.memory_space<vmem>>, %arg6: memref<64x32xbf16, #tpu.memory_space<vmem>>, %arg7: memref<1x32xf32, #tpu.memory_space<vmem>>, %arg8: memref<32x128xbf16, #tpu.memory_space<vmem>>, %arg9: memref<1x128xf32, #tpu.memory_space<vmem>>, %arg10: memref<8x128xf32, #tpu.memory_space<vmem>>) attributes {dimension_semantics = [#tpu.dimension_semantics<parallel>], iteration_bounds = array<i64: 2>, scalar_prefetch = 0 : i64, scratch_operands = 0 : i64, tpu.core_type = #tpu.core_type<tc>, window_params = [{transform_indices = @transform_0, window_bounds = array<i64: 8, 32>}, {pipeline_mode = #tpu.pipeline_mode<synchronous>, transform_indices = @transform_1, window_bounds = array<i64: 32, 64>}, {pipeline_mode = #tpu.pipeline_mode<synchronous>, transform_indices = @transform_2, window_bounds = array<i64: 1, 64>}, {pipeline_mode = #tpu.pipeline_mode<synchronous>, transform_indices = @transform_3, window_bounds = array<i64: 64, 64>}, {pipeline_mode = #tpu.pipeline_mode<synchronous>, transform_indices = @transform_4, window_bounds = array<i64: 1, 64>}, {pipeline_mode = #tpu.pipeline_mode<synchronous>, transform_indices = @transform_5, window_bounds = array<i64: 64, 32>}, {pipeline_mode = #tpu.pipeline_mode<synchronous>, transform_indices = @transform_6, window_bounds = array<i64: 1, 32>}, {pipeline_mode = #tpu.pipeline_mode<synchronous>, transform_indices = @transform_7, window_bounds = array<i64: 32, 128>}, {pipeline_mode = #tpu.pipeline_mode<synchronous>, transform_indices = @transform_8, window_bounds = array<i64: 1, 128>}, {transform_indices = @transform_9, window_bounds = array<i64: 8, 128>}]} {
    %c0 = arith.constant 0 : index
    %c0_0 = arith.constant 0 : index
    %0 = vector.load %arg1[%c0, %c0_0] : memref<8x32xbf16, #tpu.memory_space<vmem>>, vector<8x32xbf16>
    %c0_1 = arith.constant 0 : index
    %c0_2 = arith.constant 0 : index
    %1 = vector.load %arg2[%c0_1, %c0_2] : memref<32x64xbf16, #tpu.memory_space<vmem>>, vector<32x64xbf16>
    %cst = arith.constant dense<0.000000e+00> : vector<8x64xf32>
    %2 = tpu.matmul %0, %1, %cst {dimension_numbers = #tpu.dot_dimension_numbers<[1], [0], [0], [1], [0, 0, 1, 1], [], []>} : vector<8x32xbf16>, vector<32x64xbf16>, vector<8x64xf32> -> vector<8x64xf32>
    %c0_3 = arith.constant 0 : index
    %c0_4 = arith.constant 0 : index
    %3 = vector.load %arg3[%c0_3, %c0_4] : memref<1x64xf32, #tpu.memory_space<vmem>>, vector<1x64xf32>
    %4 = vector.broadcast %3 : vector<1x64xf32> to vector<8x64xf32>
    %5 = arith.addf %2, %4 : vector<8x64xf32>
    %cst_5 = arith.constant 0.000000e+00 : f32
    %6 = vector.broadcast %cst_5 : f32 to vector<8x64xf32>
    %7 = arith.maximumf %5, %6 : vector<8x64xf32>
    %8 = arith.truncf %7 : vector<8x64xf32> to vector<8x64xbf16>
    %c0_6 = arith.constant 0 : index
    %c0_7 = arith.constant 0 : index
    %9 = vector.load %arg4[%c0_6, %c0_7] : memref<64x64xbf16, #tpu.memory_space<vmem>>, vector<64x64xbf16>
    %cst_8 = arith.constant dense<0.000000e+00> : vector<8x64xf32>
    %10 = tpu.matmul %8, %9, %cst_8 {dimension_numbers = #tpu.dot_dimension_numbers<[1], [0], [0], [1], [0, 0, 1, 1], [], []>} : vector<8x64xbf16>, vector<64x64xbf16>, vector<8x64xf32> -> vector<8x64xf32>
    %c0_9 = arith.constant 0 : index
    %c0_10 = arith.constant 0 : index
    %11 = vector.load %arg5[%c0_9, %c0_10] : memref<1x64xf32, #tpu.memory_space<vmem>>, vector<1x64xf32>
    %12 = vector.broadcast %11 : vector<1x64xf32> to vector<8x64xf32>
    %13 = arith.addf %10, %12 : vector<8x64xf32>
    %cst_11 = arith.constant 0.000000e+00 : f32
    %14 = vector.broadcast %cst_11 : f32 to vector<8x64xf32>
    %15 = arith.maximumf %13, %14 : vector<8x64xf32>
    %16 = arith.truncf %15 : vector<8x64xf32> to vector<8x64xbf16>
    %c0_12 = arith.constant 0 : index
    %c0_13 = arith.constant 0 : index
    %17 = vector.load %arg6[%c0_12, %c0_13] : memref<64x32xbf16, #tpu.memory_space<vmem>>, vector<64x32xbf16>
    %cst_14 = arith.constant dense<0.000000e+00> : vector<8x32xf32>
    %18 = tpu.matmul %16, %17, %cst_14 {dimension_numbers = #tpu.dot_dimension_numbers<[1], [0], [0], [1], [0, 0, 1, 1], [], []>} : vector<8x64xbf16>, vector<64x32xbf16>, vector<8x32xf32> -> vector<8x32xf32>
    %c0_15 = arith.constant 0 : index
    %c0_16 = arith.constant 0 : index
    %19 = vector.load %arg7[%c0_15, %c0_16] : memref<1x32xf32, #tpu.memory_space<vmem>>, vector<1x32xf32>
    %20 = vector.broadcast %19 : vector<1x32xf32> to vector<8x32xf32>
    %21 = arith.addf %18, %20 : vector<8x32xf32>
    %cst_17 = arith.constant 0.000000e+00 : f32
    %22 = vector.broadcast %cst_17 : f32 to vector<8x32xf32>
    %23 = arith.maximumf %21, %22 : vector<8x32xf32>
    %24 = arith.truncf %23 : vector<8x32xf32> to vector<8x32xbf16>
    %c0_18 = arith.constant 0 : index
    %c0_19 = arith.constant 0 : index
    %25 = vector.load %arg8[%c0_18, %c0_19] : memref<32x128xbf16, #tpu.memory_space<vmem>>, vector<32x128xbf16>
    %cst_20 = arith.constant dense<0.000000e+00> : vector<8x128xf32>
    %26 = tpu.matmul %24, %25, %cst_20 {dimension_numbers = #tpu.dot_dimension_numbers<[1], [0], [0], [1], [0, 0, 1, 1], [], []>} : vector<8x32xbf16>, vector<32x128xbf16>, vector<8x128xf32> -> vector<8x128xf32>
    %c0_21 = arith.constant 0 : index
    %c0_22 = arith.constant 0 : index
    %27 = vector.load %arg9[%c0_21, %c0_22] : memref<1x128xf32, #tpu.memory_space<vmem>>, vector<1x128xf32>
    %28 = vector.broadcast %27 : vector<1x128xf32> to vector<8x128xf32>
    %29 = arith.addf %26, %28 : vector<8x128xf32>
    %c0_23 = arith.constant 0 : index
    %c0_24 = arith.constant 0 : index
    %30 = vector.load %arg10[%c0_23, %c0_24] : memref<8x128xf32, #tpu.memory_space<vmem>>, vector<8x128xf32>
    tpu.vector_store %arg10[%c0_23, %c0_24], %29 {strides = array<i32>} : memref<8x128xf32, #tpu.memory_space<vmem>>, vector<8x128xf32>,
    return
  }
  func.func @transform_0(%arg0: i32) -> (i32, i32) {
    %c0_i32 = arith.constant 0 : i32
    %c0_i32_0 = arith.constant 0 : i32
    return %arg0, %c0_i32 : i32, i32
  }
  func.func @transform_1(%arg0: i32) -> (i32, i32) {
    %c0_i32 = arith.constant 0 : i32
    %c0_i32_0 = arith.constant 0 : i32
    %c0_i32_1 = arith.constant 0 : i32
    return %c0_i32, %c0_i32_0 : i32, i32
  }
  func.func @transform_2(%arg0: i32) -> (i32, i32) {
    %c0_i32 = arith.constant 0 : i32
    %c0_i32_0 = arith.constant 0 : i32
    %c0_i32_1 = arith.constant 0 : i32
    return %c0_i32, %c0_i32_0 : i32, i32
  }
  func.func @transform_3(%arg0: i32) -> (i32, i32) {
    %c0_i32 = arith.constant 0 : i32
    %c0_i32_0 = arith.constant 0 : i32
    %c0_i32_1 = arith.constant 0 : i32
    return %c0_i32, %c0_i32_0 : i32, i32
  }
  func.func @transform_4(%arg0: i32) -> (i32, i32) {
    %c0_i32 = arith.constant 0 : i32
    %c0_i32_0 = arith.constant 0 : i32
    %c0_i32_1 = arith.constant 0 : i32
    return %c0_i32, %c0_i32_0 : i32, i32
  }
  func.func @transform_5(%arg0: i32) -> (i32, i32) {
    %c0_i32 = arith.constant 0 : i32
    %c0_i32_0 = arith.constant 0 : i32
    %c0_i32_1 = arith.constant 0 : i32
    return %c0_i32, %c0_i32_0 : i32, i32
  }
  func.func @transform_6(%arg0: i32) -> (i32, i32) {
    %c0_i32 = arith.constant 0 : i32
    %c0_i32_0 = arith.constant 0 : i32
    %c0_i32_1 = arith.constant 0 : i32
    return %c0_i32, %c0_i32_0 : i32, i32
  }
  func.func @transform_7(%arg0: i32) -> (i32, i32) {
    %c0_i32 = arith.constant 0 : i32
    %c0_i32_0 = arith.constant 0 : i32
    %c0_i32_1 = arith.constant 0 : i32
    return %c0_i32, %c0_i32_0 : i32, i32
  }
  func.func @transform_8(%arg0: i32) -> (i32, i32) {
    %c0_i32 = arith.constant 0 : i32
    %c0_i32_0 = arith.constant 0 : i32
    %c0_i32_1 = arith.constant 0 : i32
    return %c0_i32, %c0_i32_0 : i32, i32
  }
  func.func @transform_9(%arg0: i32) -> (i32, i32) {
    %c0_i32 = arith.constant 0 : i32
    %c0_i32_0 = arith.constant 0 : i32
    return %arg0, %c0_i32 : i32, i32
  }
}

module attributes {stable_mosaic.version = 11 : i64} {
  func.func @_mlp_kernel(%arg0: i32, %arg1: memref<8x32xbf16, #tpu.memory_space<vmem>>, %arg2: memref<32x64xbf16, #tpu.memory_space<vmem>>, %arg3: memref<1x64xf32, #tpu.memory_space<vmem>>, %arg4: memref<64x64xbf16, #tpu.memory_space<vmem>>, %arg5: memref<1x64xf32, #tpu.memory_space<vmem>>, %arg6: memref<64x32xbf16, #tpu.memory_space<vmem>>, %arg7: memref<1x32xf32, #tpu.memory_space<vmem>>, %arg8: memref<32x128xbf16, #tpu.memory_space<vmem>>, %arg9: memref<1x128xf32, #tpu.memory_space<vmem>>, %arg10: memref<8x128xf32, #tpu.memory_space<vmem>>) attributes {dimension_semantics = [#tpu.dimension_semantics<parallel>], iteration_bounds = array<i64: 2>, scalar_prefetch = 0 : i64, scratch_operands = 0 : i64, tpu.core_type = #tpu.core_type<tc>, window_params = [{transform_indices = @transform_0, window_bounds = array<i64: 8, 32>}, {pipeline_mode = #tpu.pipeline_mode<synchronous>, transform_indices = @transform_1, window_bounds = array<i64: 32, 64>}, {pipeline_mode = #tpu.pipeline_mode<synchronous>, transform_indices = @transform_2, window_bounds = array<i64: 1, 64>}, {pipeline_mode = #tpu.pipeline_mode<synchronous>, transform_indices = @transform_3, window_bounds = array<i64: 64, 64>}, {pipeline_mode = #tpu.pipeline_mode<synchronous>, transform_indices = @transform_4, window_bounds = array<i64: 1, 64>}, {pipeline_mode = #tpu.pipeline_mode<synchronous>, transform_indices = @transform_5, window_bounds = array<i64: 64, 32>}, {pipeline_mode = #tpu.pipeline_mode<synchronous>, transform_indices = @transform_6, window_bounds = array<i64: 1, 32>}, {pipeline_mode = #tpu.pipeline_mode<synchronous>, transform_indices = @transform_7, window_bounds = array<i64: 32, 128>}, {pipeline_mode = #tpu.pipeline_mode<synchronous>, transform_indices = @transform_8, window_bounds = array<i64: 1, 128>}, {transform_indices = @transform_9, window_bounds = array<i64: 8, 128>}]} {
    %c0 = arith.constant 0 : index
    %c0_0 = arith.constant 0 : index
    %0 = vector.load %arg1[%c0, %c0_0] : memref<8x32xbf16, #tpu.memory_space<vmem>>, vector<8x32xbf16>
    %c0_1 = arith.constant 0 : index
    %c0_2 = arith.constant 0 : index
    %1 = vector.load %arg2[%c0_1, %c0_2] : memref<32x64xbf16, #tpu.memory_space<vmem>>, vector<32x64xbf16>
    %cst = arith.constant dense<0.000000e+00> : vector<8x64xf32>
    %2 = tpu.matmul %0, %1, %cst {dimension_numbers = #tpu.dot_dimension_numbers<[1], [0], [0], [1], [0, 0, 1, 1], [], []>} : vector<8x32xbf16>, vector<32x64xbf16>, vector<8x64xf32> -> vector<8x64xf32>
    %c0_3 = arith.constant 0 : index
    %c0_4 = arith.constant 0 : index
    %3 = vector.load %arg3[%c0_3, %c0_4] : memref<1x64xf32, #tpu.memory_space<vmem>>, vector<1x64xf32>
    %4 = vector.broadcast %3 : vector<1x64xf32> to vector<8x64xf32>
    %5 = arith.addf %2, %4 : vector<8x64xf32>
    %cst_5 = arith.constant 0.000000e+00 : f32
    %6 = vector.broadcast %cst_5 : f32 to vector<8x64xf32>
    %7 = arith.maximumf %5, %6 : vector<8x64xf32>
    %8 = arith.truncf %7 : vector<8x64xf32> to vector<8x64xbf16>
    %c0_6 = arith.constant 0 : index
    %c0_7 = arith.constant 0 : index
    %9 = vector.load %arg4[%c0_6, %c0_7] : memref<64x64xbf16, #tpu.memory_space<vmem>>, vector<64x64xbf16>
    %cst_8 = arith.constant dense<0.000000e+00> : vector<8x64xf32>
    %10 = tpu.matmul %8, %9, %cst_8 {dimension_numbers = #tpu.dot_dimension_numbers<[1], [0], [0], [1], [0, 0, 1, 1], [], []>} : vector<8x64xbf16>, vector<64x64xbf16>, vector<8x64xf32> -> vector<8x64xf32>
    %c0_9 = arith.constant 0 : index
    %c0_10 = arith.constant 0 : index
    %11 = vector.load %arg5[%c0_9, %c0_10] : memref<1x64xf32, #tpu.memory_space<vmem>>, vector<1x64xf32>
    %12 = vector.broadcast %11 : vector<1x64xf32> to vector<8x64xf32>
    %13 = arith.addf %10, %12 : vector<8x64xf32>
    %cst_11 = arith.constant 0.000000e+00 : f32
    %14 = vector.broadcast %cst_11 : f32 to vector<8x64xf32>
    %15 = arith.maximumf %13, %14 : vector<8x64xf32>
    %16 = arith.truncf %15 : vector<8x64xf32> to vector<8x64xbf16>
    %c0_12 = arith.constant 0 : index
    %c0_13 = arith.constant 0 : index
    %17 = vector.load %arg6[%c0_12, %c0_13] : memref<64x32xbf16, #tpu.memory_space<vmem>>, vector<64x32xbf16>
    %cst_14 = arith.constant dense<0.000000e+00> : vector<8x32xf32>
    %18 = tpu.matmul %16, %17, %cst_14 {dimension_numbers = #tpu.dot_dimension_numbers<[1], [0], [0], [1], [0, 0, 1, 1], [], []>} : vector<8x64xbf16>, vector<64x32xbf16>, vector<8x32xf32> -> vector<8x32xf32>
    %c0_15 = arith.constant 0 : index
    %c0_16 = arith.constant 0 : index
    %19 = vector.load %arg7[%c0_15, %c0_16] : memref<1x32xf32, #tpu.memory_space<vmem>>, vector<1x32xf32>
    %20 = vector.broadcast %19 : vector<1x32xf32> to vector<8x32xf32>
    %21 = arith.addf %18, %20 : vector<8x32xf32>
    %cst_17 = arith.constant 0.000000e+00 : f32
    %22 = vector.broadcast %cst_17 : f32 to vector<8x32xf32>
    %23 = arith.maximumf %21, %22 : vector<8x32xf32>
    %24 = arith.truncf %23 : vector<8x32xf32> to vector<8x32xbf16>
    %c0_18 = arith.constant 0 : index
    %c0_19 = arith.constant 0 : index
    %25 = vector.load %arg8[%c0_18, %c0_19] : memref<32x128xbf16, #tpu.memory_space<vmem>>, vector<32x128xbf16>
    %cst_20 = arith.constant dense<0.000000e+00> : vector<8x128xf32>
    %26 = tpu.matmul %24, %25, %cst_20 {dimension_numbers = #tpu.dot_dimension_numbers<[1], [0], [0], [1], [0, 0, 1, 1], [], []>} : vector<8x32xbf16>, vector<32x128xbf16>, vector<8x128xf32> -> vector<8x128xf32>
    %c0_21 = arith.constant 0 : index
    %c0_22 = arith.constant 0 : index
    %27 = vector.load %arg9[%c0_21, %c0_22] : memref<1x128xf32, #tpu.memory_space<vmem>>, vector<1x128xf32>
    %28 = vector.broadcast %27 : vector<1x128xf32> to vector<8x128xf32>
    %29 = arith.addf %26, %28 : vector<8x128xf32>
    %c0_23 = arith.constant 0 : index
    %c0_24 = arith.constant 0 : index
    %30 = vector.load %arg10[%c0_23, %c0_24] : memref<8x128xf32, #tpu.memory_space<vmem>>, vector<8x128xf32>
    tpu.vector_store %arg10[%c0_23, %c0_24], %29 {strides = array<i32>} : memref<8x128xf32, #tpu.memory_space<vmem>>, vector<8x128xf32>,
    return
  }
  func.func @transform_0(%arg0: i32) -> (i32, i32) {
    %c0_i32 = arith.constant 0 : i32
    %c0_i32_0 = arith.constant 0 : i32
    return %arg0, %c0_i32 : i32, i32
  }
  func.func @transform_1(%arg0: i32) -> (i32, i32) {
    %c0_i32 = arith.constant 0 : i32
    %c0_i32_0 = arith.constant 0 : i32
    %c0_i32_1 = arith.constant 0 : i32
    return %c0_i32, %c0_i32_0 : i32, i32
  }
  func.func @transform_2(%arg0: i32) -> (i32, i32) {
    %c0_i32 = arith.constant 0 : i32
    %c0_i32_0 = arith.constant 0 : i32
    %c0_i32_1 = arith.constant 0 : i32
    return %c0_i32, %c0_i32_0 : i32, i32
  }
  func.func @transform_3(%arg0: i32) -> (i32, i32) {
    %c0_i32 = arith.constant 0 : i32
    %c0_i32_0 = arith.constant 0 : i32
    %c0_i32_1 = arith.constant 0 : i32
    return %c0_i32, %c0_i32_0 : i32, i32
  }
  func.func @transform_4(%arg0: i32) -> (i32, i32) {
    %c0_i32 = arith.constant 0 : i32
    %c0_i32_0 = arith.constant 0 : i32
    %c0_i32_1 = arith.constant 0 : i32
    return %c0_i32, %c0_i32_0 : i32, i32
  }
  func.func @transform_5(%arg0: i32) -> (i32, i32) {
    %c0_i32 = arith.constant 0 : i32
    %c0_i32_0 = arith.constant 0 : i32
    %c0_i32_1 = arith.constant 0 : i32
    return %c0_i32, %c0_i32_0 : i32, i32
  }
  func.func @transform_6(%arg0: i32) -> (i32, i32) {
    %c0_i32 = arith.constant 0 : i32
    %c0_i32_0 = arith.constant 0 : i32
    %c0_i32_1 = arith.constant 0 : i32
    return %c0_i32, %c0_i32_0 : i32, i32
  }
  func.func @transform_7(%arg0: i32) -> (i32, i32) {
    %c0_i32 = arith.constant 0 : i32
    %c0_i32_0 = arith.constant 0 : i32
    %c0_i32_1 = arith.constant 0 : i32
    return %c0_i32, %c0_i32_0 : i32, i32
  }
  func.func @transform_8(%arg0: i32) -> (i32, i32) {
    %c0_i32 = arith.constant 0 : i32
    %c0_i32_0 = arith.constant 0 : i32
    %c0_i32_1 = arith.constant 0 : i32
    return %c0_i32, %c0_i32_0 : i32, i32
  }
  func.func @transform_9(%arg0: i32) -> (i32, i32) {
    %c0_i32 = arith.constant 0 : i32
    %c0_i32_0 = arith.constant 0 : i32
    return %arg0, %c0_i32 : i32, i32
  }
}

</mosaic_0001>

<bundles_post_ra>
// kernel: _forward_impl.1
= control target key start
LH: loop header
LB: loop body
LE: loop exit
PB: predicated region body
PF: predicated region fallthrough
CT: control target
= control target key end

     0   :  { %s855_s30 = smov 0   ;;  %s932_s0 = inlined_call_operand.vmem [shape: bf16[16,32], index: 0, kind: input, shape index: {}]   ;;  %s933_s1 = inlined_call_operand.vmem [shape: bf16[32,64], index: 1, kind: input, shape index: {}]   ;;  %s934_s2 = inlined_call_operand.vmem [shape: f32[1,64], index: 2, kind: input, shape index: {}]   ;;  %s935_s3 = inlined_call_operand.vmem [shape: bf16[64,64], index: 3, kind: input, shape index: {}]   ;;  %s936_s4 = inlined_call_operand.vmem [shape: f32[1,64], index: 4, kind: input, shape index: {}]   ;;  %s937_s5 = inlined_call_operand.vmem [shape: bf16[64,32], index: 5, kind: input, shape index: {}]   ;;  %s938_s6 = inlined_call_operand.vmem [shape: f32[1,32], index: 6, kind: input, shape index: {}]   ;;  %s939_s7 = inlined_call_operand.vmem [shape: bf16[32,128], index: 7, kind: input, shape index: {}]   ;;  %s940_s8 = inlined_call_operand.vmem [shape: f32[1,128], index: 8, kind: input, shape index: {}]   ;;  %s941_s9 = inlined_call_operand.vmem [shape: f32[16,128], index: 9, kind: output, shape index: {}]  }
   0x1 LB: > { %s688_s10 = sadd.s32 4294967295, %s801_s30   ;;  %p692_p0 = scmp.ge.s32.totalorder %s801_s30, 1  ;;  %s801_s30 = sphi %s855_s30, %s19_s30  }
   0x2   : > { %p286_p1 = scmp.lt.s32.totalorder %s801_s30, 3 }
   0x4   : > { %p287_p2 = pnand %p692_p0, %p286_p1 }
   0x5   : > { %v783_v0 = vld [vmem:[%s933_s1] sm:$0xff] (!%p287_p2)   ;;  %v803_v1 = vmov (!%p287_p2), 0.0   ;;  %v784_v2 = vld [vmem:[%s933_s1 + $0x8] sm:$0xff] (!%p287_p2)   ;;  %vm804_vm0 = vmmov (!%p287_p2), 0   ;;  %p320_p3 = scmp.lt.s32.totalorder (!%p287_p2), %s688_s10, 1  ;;  %vm353_vm1 = vcmask (!%p287_p2), 261120  }
   0x6   : > { %290 = sbr.rel (%p287_p2) target bundleno = 886 (0x376), region = 56  ;;  %733 = vmatprep.subr.bf16.mxu0 (!%p287_p2), %v803_v1  ;;  %741 = vmatprep.subr.bf16.mxu1 (!%p287_p2), %v803_v1  ;;  %v785_v3 = vld [vmem:[%s935_s3] sm:$0xff] (!%p287_p2)   ;;  %v786_v4 = vld [vmem:[%s935_s3 + $0x8] sm:$0xff] (!%p287_p2)   ;;  %v787_v6 = vld [vmem:[%s935_s3 + $0x10] sm:$0xff] (!%p287_p2)   ;;  %vm438_vm2 = vcmask (!%p287_p2), 523264  }
   0x7   : > { %734 = vmatpush3.bf16.msra.mxu0 (!%p287_p2), %v783_v0  ;;  %737 = vmatprep.mubr.msk.bf16.mxu0 (!%p287_p2), %vm804_vm0, %v803_v1  ;;  %v788_v7 = vld [vmem:[%s935_s3 + $0x18] sm:$0xff] (!%p287_p2)   ;;  %v789_v8 = vld [vmem:[%s937_s5] sm:$0xff] (!%p287_p2)   ;;  %v790_v9 = vld [vmem:[%s937_s5 + $0x8] sm:$0xff] (!%p287_p2)  }
   0x8   : > { %735 = vmatprep.subr.bf16.mxu0 (!%p287_p2), %v803_v1  ;;  %749 = vmatprep.mubr.msk.bf16.mxu1 (!%p287_p2), %vm804_vm0, %v803_v1  ;;  %v695_v10 = vld [vmem:[%s934_s2] ss:$0 sm:$0xff] (!%p287_p2)  ;;  %v791_v18 = vld [vmem:[%s937_s5 + $0x10] sm:$0xff] (!%p287_p2)   ;;  %v792_v19 = vld [vmem:[%s937_s5 + $0x18] sm:$0xff] (!%p287_p2)  }
   0x9   : > { %742 = vmatpush3.bf16.msra.mxu1 (!%p287_p2), %v785_v3  ;;  %v793_v20 = vld [vmem:[%s939_s7] sm:$0xff] (!%p287_p2)   ;;  %v794_v29 = vld [vmem:[%s939_s7 + $0x8] sm:$0xff] (!%p287_p2)  }
   0xa   : > { %743 = vmatprep.subr.bf16.mxu1 (!%p287_p2), %v803_v1  ;;  %v699_v21 = vld [vmem:[%s936_s4] ss:$0 sm:$0xff] (!%p287_p2) }
   0xb   : > { %736 = vmatpush3.bf16.msra.mxu0 (!%p287_p2), %v784_v2  ;;  %v705_v30 = vld [vmem:[%s938_s6] ss:$0 sm:$0xff] (!%p287_p2) }
   0xc   : > { %753 = vmatprep.subr.bf16.mxu0 (!%p287_p2), %v803_v1  ;;  %v711_v38 = vld [vmem:[%s940_s8] ss:$0 sm:$0xff] (!%p287_p2) }
   0xd   : > { %s943_s10 = smov (!%p320_p3, %s688_s10), 1  ;;  %744 = vmatpush3.bf16.msra.mxu1 %v786_v4 }
   0xe   : > { %s693_s19 = sshll.u32 %s943_s10, 2  ;;  %745 = vmatprep.subr.bf16.mxu1 %v803_v1  ;;  %s694_s26 = sshll.u32 %s943_s10, 3 }
   0xf   : > { %s323_s22 = scalar_lea.vmem %s932_s0, %s693_s19  ;;  %s327_s12 = scalar_lea.vmem %s941_s9, %s694_s26 }
  0x10   : > { %v329_v5 = vld [vmem:[%s323_s22] sm:$0xf] }
  0x11   : > { %738 = vmatmul.mubr.msk.bf16.vlgmr.msra.gmra.mrb[0].mxu0 %vm353_vm1, %v329_v5  ;;  %746 = vmatpush3.bf16.msra.mxu1 %v787_v6 }
  0x12   : > { %761 = vmatprep.mubr.msk.bf16.mxu0 %vm804_vm0, %v803_v1  ;;  %747 = vmatprep.subr.bf16.mxu1 %v803_v1 }
  0x13   : > { %754 = vmatpush3.bf16.msra.mxu0 %v789_v8 }
  0x14   : > { %755 = vmatprep.subr.bf16.mxu0 %v803_v1 }
  0x15   : > { %748 = vmatpush3.bf16.msra.mxu1 %v788_v7 }
  0x16   : > { %765 = vmatprep.subr.bf16.mxu1 %v803_v1 }
  0x17   : > { %756 = vmatpush3.bf16.msra.mxu0 %v790_v9 }
  0x18   : > { %757 = vmatprep.subr.bf16.mxu0 %v803_v1 }
  0x1b   : > { %758 = vmatpush3.bf16.msra.mxu0 %v791_v18 }
  0x1c   : > { %759 = vmatprep.subr.bf16.mxu0 %v803_v1 }
  0x1f   : > { %760 = vmatpush3.bf16.msra.mxu0 %v792_v19 }
  0xe4   : > { %v391_v11 = vpop.f32.mrb[0].mxu0 }
  0xe5   : > { %v392_v12 = vadd.f32 %v695_v10, %v391_v11  ;;  %v739_v13 = vpop.f32.mrb[1].mxu0 }
  0xe6   : > { %v394_v14 = vpop.f32.mrb[2].mxu0 }
  0xe7   : > { %v397_v15 = vmax.f32 %v392_v12, 0.0  ;;  %v740_v16 = vpop.f32.mrb[3].mxu0 }
  0xe9   : > { %v398_v17 = vpack.c.bf16 %v397_v15, %v397_v15 }
  0xeb   : > { %750 = vmatmul.mubr.msk.bf16.vlgmr.msra.gmra.mrb[0].mxu1 %vm438_vm2, %v398_v17 }
  0xec   : > { %769 = vmatprep.mubr.msk.bf16.mxu1 %vm804_vm0, %v803_v1  ;;  %766 = vmatpush3.bf16.msra.mxu1 %v793_v20 }
  0xed   : > { %767 = vmatprep.subr.bf16.mxu1 %v803_v1 }
  0xf0   : > { %768 = vmatpush3.bf16.msra.mxu1 %v794_v29 }
 0x1be   : > { %v476_v22 = vpop.f32.mrb[0].mxu1 }
 0x1bf   : > { %v477_v23 = vadd.f32 %v699_v21, %v476_v22  ;;  %v751_v24 = vpop.f32.mrb[1].mxu1 }
 0x1c0   : > { %v479_v25 = vpop.f32.mrb[2].mxu1 }
 0x1c1   : > { %v482_v26 = vmax.f32 %v477_v23, 0.0  ;;  %v752_v27 = vpop.f32.mrb[3].mxu1 }
 0x1c3   : > { %v483_v28 = vpack.c.bf16 %v482_v26, %v482_v26 }
 0x1c5   : > { %762 = vmatmul.mubr.msk.bf16.vlgmr.msra.gmra.mrb[4].mxu0 %vm438_vm2, %v483_v28 }
 0x298   : > { %v560_v31 = vpop.f32.mrb[4].mxu0 }
 0x299   : > { %v561_v32 = vadd.f32 %v705_v30, %v560_v31  ;;  %v763_v33 = vpop.f32.mrb[5].mxu0 }
 0x29a   : > { %v563_v34 = vpop.f32.mrb[6].mxu0 }
 0x29b   : > { %v566_v35 = vmax.f32 %v561_v32, 0.0  ;;  %v764_v36 = vpop.f32.mrb[7].mxu0 }
 0x29d   : > { %v567_v37 = vpack.c.bf16 %v566_v35, %v566_v35 }
 0x29f   : > { %770 = vmatmul.mubr.msk.bf16.vlgmr.msra.gmra.mrb[4].mxu1 %vm353_vm1, %v567_v37 }
 0x372   : > { %v628_v39 = vpop.f32.mrb[4].mxu1 }
 0x373   : > { %v629_v40 = vadd.f32 %v711_v38, %v628_v39  ;;  %v771_v41 = vpop.f32.mrb[5].mxu1 }
 0x374   : > { %v631_v42 = vpop.f32.mrb[6].mxu1 }
 0x375   : > { %634 = vst [vmem:[%s327_s12] sm:$0xff] %v629_v40  ;;  %v772_v43 = vpop.f32.mrb[7].mxu1 }
 0x376 PF: > { %s19_s30 = sadd.s32 1, %s801_s30  }
 0x377   : > { %p16_p4 = scmp.ge.s32.totalorder %s19_s30, 4  }
 0x379   :  { %18 = sbr.rel (!%p16_p4) target bundleno = 1 (0x1), region = 86 }

// kernel: _forward_impl.1
= control target key start
LH: loop header
LB: loop body
LE: loop exit
PB: predicated region body
PF: predicated region fallthrough
CT: control target
= control target key end

     0   :  { %s855_s30 = smov 0   ;;  %s932_s0 = inlined_call_operand.vmem [shape: bf16[16,32], index: 0, kind: input, shape index: {}]   ;;  %s933_s1 = inlined_call_operand.vmem [shape: bf16[32,64], index: 1, kind: input, shape index: {}]   ;;  %s934_s2 = inlined_call_operand.vmem [shape: f32[1,64], index: 2, kind: input, shape index: {}]   ;;  %s935_s3 = inlined_call_operand.vmem [shape: bf16[64,64], index: 3, kind: input, shape index: {}]   ;;  %s936_s4 = inlined_call_operand.vmem [shape: f32[1,64], index: 4, kind: input, shape index: {}]   ;;  %s937_s5 = inlined_call_operand.vmem [shape: bf16[64,32], index: 5, kind: input, shape index: {}]   ;;  %s938_s6 = inlined_call_operand.vmem [shape: f32[1,32], index: 6, kind: input, shape index: {}]   ;;  %s939_s7 = inlined_call_operand.vmem [shape: bf16[32,128], index: 7, kind: input, shape index: {}]   ;;  %s940_s8 = inlined_call_operand.vmem [shape: f32[1,128], index: 8, kind: input, shape index: {}]   ;;  %s941_s9 = inlined_call_operand.vmem [shape: f32[16,128], index: 9, kind: output, shape index: {}]  }
   0x1 LB: > { %s688_s10 = sadd.s32 4294967295, %s801_s30   ;;  %p692_p0 = scmp.ge.s32.totalorder %s801_s30, 1  ;;  %s801_s30 = sphi %s855_s30, %s19_s30  }
   0x2   : > { %p286_p1 = scmp.lt.s32.totalorder %s801_s30, 3 }
   0x4   : > { %p287_p2 = pnand %p692_p0, %p286_p1 }
   0x5   : > { %v783_v0 = vld [vmem:[%s933_s1] sm:$0xff] (!%p287_p2)   ;;  %v803_v1 = vmov (!%p287_p2), 0.0   ;;  %v784_v2 = vld [vmem:[%s933_s1 + $0x8] sm:$0xff] (!%p287_p2)   ;;  %vm804_vm0 = vmmov (!%p287_p2), 0   ;;  %p320_p3 = scmp.lt.s32.totalorder (!%p287_p2), %s688_s10, 1  ;;  %vm353_vm1 = vcmask (!%p287_p2), 261120  }
   0x6   : > { %290 = sbr.rel (%p287_p2) target bundleno = 886 (0x376), region = 56  ;;  %733 = vmatprep.subr.bf16.mxu0 (!%p287_p2), %v803_v1  ;;  %741 = vmatprep.subr.bf16.mxu1 (!%p287_p2), %v803_v1  ;;  %v785_v3 = vld [vmem:[%s935_s3] sm:$0xff] (!%p287_p2)   ;;  %v786_v4 = vld [vmem:[%s935_s3 + $0x8] sm:$0xff] (!%p287_p2)   ;;  %v787_v6 = vld [vmem:[%s935_s3 + $0x10] sm:$0xff] (!%p287_p2)   ;;  %vm438_vm2 = vcmask (!%p287_p2), 523264  }
   0x7   : > { %734 = vmatpush3.bf16.msra.mxu0 (!%p287_p2), %v783_v0  ;;  %737 = vmatprep.mubr.msk.bf16.mxu0 (!%p287_p2), %vm804_vm0, %v803_v1  ;;  %v788_v7 = vld [vmem:[%s935_s3 + $0x18] sm:$0xff] (!%p287_p2)   ;;  %v789_v8 = vld [vmem:[%s937_s5] sm:$0xff] (!%p287_p2)   ;;  %v790_v9 = vld [vmem:[%s937_s5 + $0x8] sm:$0xff] (!%p287_p2)  }
   0x8   : > { %735 = vmatprep.subr.bf16.mxu0 (!%p287_p2), %v803_v1  ;;  %749 = vmatprep.mubr.msk.bf16.mxu1 (!%p287_p2), %vm804_vm0, %v803_v1  ;;  %v695_v10 = vld [vmem:[%s934_s2] ss:$0 sm:$0xff] (!%p287_p2)  ;;  %v791_v18 = vld [vmem:[%s937_s5 + $0x10] sm:$0xff] (!%p287_p2)   ;;  %v792_v19 = vld [vmem:[%s937_s5 + $0x18] sm:$0xff] (!%p287_p2)  }
   0x9   : > { %742 = vmatpush3.bf16.msra.mxu1 (!%p287_p2), %v785_v3  ;;  %v793_v20 = vld [vmem:[%s939_s7] sm:$0xff] (!%p287_p2)   ;;  %v794_v29 = vld [vmem:[%s939_s7 + $0x8] sm:$0xff] (!%p287_p2)  }
   0xa   : > { %743 = vmatprep.subr.bf16.mxu1 (!%p287_p2), %v803_v1  ;;  %v699_v21 = vld [vmem:[%s936_s4] ss:$0 sm:$0xff] (!%p287_p2) }
   0xb   : > { %736 = vmatpush3.bf16.msra.mxu0 (!%p287_p2), %v784_v2  ;;  %v705_v30 = vld [vmem:[%s938_s6] ss:$0 sm:$0xff] (!%p287_p2) }
   0xc   : > { %753 = vmatprep.subr.bf16.mxu0 (!%p287_p2), %v803_v1  ;;  %v711_v38 = vld [vmem:[%s940_s8] ss:$0 sm:$0xff] (!%p287_p2) }
   0xd   : > { %s943_s10 = smov (!%p320_p3, %s688_s10), 1  ;;  %744 = vmatpush3.bf16.msra.mxu1 %v786_v4 }
   0xe   : > { %s693_s19 = sshll.u32 %s943_s10, 2  ;;  %745 = vmatprep.subr.bf16.mxu1 %v803_v1  ;;  %s694_s26 = sshll.u32 %s943_s10, 3 }
   0xf   : > { %s323_s22 = scalar_lea.vmem %s932_s0, %s693_s19  ;;  %s327_s12 = scalar_lea.vmem %s941_s9, %s694_s26 }
  0x10   : > { %v329_v5 = vld [vmem:[%s323_s22] sm:$0xf] }
  0x11   : > { %738 = vmatmul.mubr.msk.bf16.vlgmr.msra.gmra.mrb[0].mxu0 %vm353_vm1, %v329_v5  ;;  %746 = vmatpush3.bf16.msra.mxu1 %v787_v6 }
  0x12   : > { %761 = vmatprep.mubr.msk.bf16.mxu0 %vm804_vm0, %v803_v1  ;;  %747 = vmatprep.subr.bf16.mxu1 %v803_v1 }
  0x13   : > { %754 = vmatpush3.bf16.msra.mxu0 %v789_v8 }
  0x14   : > { %755 = vmatprep.subr.bf16.mxu0 %v803_v1 }
  0x15   : > { %748 = vmatpush3.bf16.msra.mxu1 %v788_v7 }
  0x16   : > { %765 = vmatprep.subr.bf16.mxu1 %v803_v1 }
  0x17   : > { %756 = vmatpush3.bf16.msra.mxu0 %v790_v9 }
  0x18   : > { %757 = vmatprep.subr.bf16.mxu0 %v803_v1 }
  0x1b   : > { %758 = vmatpush3.bf16.msra.mxu0 %v791_v18 }
  0x1c   : > { %759 = vmatprep.subr.bf16.mxu0 %v803_v1 }
  0x1f   : > { %760 = vmatpush3.bf16.msra.mxu0 %v792_v19 }
  0xe4   : > { %v391_v11 = vpop.f32.mrb[0].mxu0 }
  0xe5   : > { %v392_v12 = vadd.f32 %v695_v10, %v391_v11  ;;  %v739_v13 = vpop.f32.mrb[1].mxu0 }
  0xe6   : > { %v394_v14 = vpop.f32.mrb[2].mxu0 }
  0xe7   : > { %v397_v15 = vmax.f32 %v392_v12, 0.0  ;;  %v740_v16 = vpop.f32.mrb[3].mxu0 }
  0xe9   : > { %v398_v17 = vpack.c.bf16 %v397_v15, %v397_v15 }
  0xeb   : > { %750 = vmatmul.mubr.msk.bf16.vlgmr.msra.gmra.mrb[0].mxu1 %vm438_vm2, %v398_v17 }
  0xec   : > { %769 = vmatprep.mubr.msk.bf16.mxu1 %vm804_vm0, %v803_v1  ;;  %766 = vmatpush3.bf16.msra.mxu1 %v793_v20 }
  0xed   : > { %767 = vmatprep.subr.bf16.mxu1 %v803_v1 }
  0xf0   : > { %768 = vmatpush3.bf16.msra.mxu1 %v794_v29 }
 0x1be   : > { %v476_v22 = vpop.f32.mrb[0].mxu1 }
 0x1bf   : > { %v477_v23 = vadd.f32 %v699_v21, %v476_v22  ;;  %v751_v24 = vpop.f32.mrb[1].mxu1 }
 0x1c0   : > { %v479_v25 = vpop.f32.mrb[2].mxu1 }
 0x1c1   : > { %v482_v26 = vmax.f32 %v477_v23, 0.0  ;;  %v752_v27 = vpop.f32.mrb[3].mxu1 }
 0x1c3   : > { %v483_v28 = vpack.c.bf16 %v482_v26, %v482_v26 }
 0x1c5   : > { %762 = vmatmul.mubr.msk.bf16.vlgmr.msra.gmra.mrb[4].mxu0 %vm438_vm2, %v483_v28 }
 0x298   : > { %v560_v31 = vpop.f32.mrb[4].mxu0 }
 0x299   : > { %v561_v32 = vadd.f32 %v705_v30, %v560_v31  ;;  %v763_v33 = vpop.f32.mrb[5].mxu0 }
 0x29a   : > { %v563_v34 = vpop.f32.mrb[6].mxu0 }
 0x29b   : > { %v566_v35 = vmax.f32 %v561_v32, 0.0  ;;  %v764_v36 = vpop.f32.mrb[7].mxu0 }
 0x29d   : > { %v567_v37 = vpack.c.bf16 %v566_v35, %v566_v35 }
 0x29f   : > { %770 = vmatmul.mubr.msk.bf16.vlgmr.msra.gmra.mrb[4].mxu1 %vm353_vm1, %v567_v37 }
 0x372   : > { %v628_v39 = vpop.f32.mrb[4].mxu1 }
 0x373   : > { %v629_v40 = vadd.f32 %v711_v38, %v628_v39  ;;  %v771_v41 = vpop.f32.mrb[5].mxu1 }
 0x374   : > { %v631_v42 = vpop.f32.mrb[6].mxu1 }
 0x375   : > { %634 = vst [vmem:[%s327_s12] sm:$0xff] %v629_v40  ;;  %v772_v43 = vpop.f32.mrb[7].mxu1 }
 0x376 PF: > { %s19_s30 = sadd.s32 1, %s801_s30  }
 0x377   : > { %p16_p4 = scmp.ge.s32.totalorder %s19_s30, 4  }
 0x379   :  { %18 = sbr.rel (!%p16_p4) target bundleno = 1 (0x1), region = 86 }

</bundles_post_ra>
